<compile_context>
chip_gen: v7x
topology: tpu7x:2x2x1
jax: 0.10.0
libtpu: 0.0.40
codegen_flags: <defaults>
</compile_context>

<pallas_src>
import functools

import jax
import jax.numpy as jnp
from jax.experimental import pallas as pl
from jax.experimental.pallas import tpu as pltpu


def _round_up(v, m):
    return (v + m - 1) // m * m


# Conservative per-kernel VMEM budget (v7x has 64 MiB physical per TC).
_VMEM_BUDGET = 40 * 1024 * 1024


def _vmem_footprint(tm, tk, dm_p, xb, wb):
    b = 0
    b += 2 * tm * dm_p * xb          # x row tiles (double-buffered)
    b += 2 * tm * dm_p * xb          # out row tiles (double-buffered)
    b += 2 * dm_p * tk * wb          # W1 slabs (double-buffered)
    b += 2 * tk * dm_p * wb          # W2 slabs (double-buffered)
    b += 4 * dm_p * 4                # gamma / beta
    b += tm * dm_p * 4               # f32 accumulator scratch
    b += tm * tk * 4                 # h intermediate
    return b


def _ffn_kernel(x_ref, w1_ref, w2_ref, gamma_ref, beta_ref, o_ref, acc_ref, *,
                inv_d, eps):
    # x_ref:     (TM, dm_p)     row tile, native dtype (same block across k)
    # w1_ref:    (dm_p, TK)     d_ff slab of W1
    # w2_ref:    (TK, dm_p)     d_ff slab of W2
    # gamma_ref: (1, dm_p)
    # beta_ref:  (1, dm_p)
    # o_ref:     (TM, dm_p)
    # acc_ref:   (TM, dm_p) f32 scratch, resident across the k axis
    k = pl.program_id(1)

    @pl.when(k == 0)
    def _():
        acc_ref[...] = jnp.zeros_like(acc_ref)

    x = x_ref[...]
    # fc1 + ReLU on this d_ff slab: MXU matmul in the input dtype, f32 acc.
    h = jnp.dot(x, w1_ref[...], preferred_element_type=jnp.float32)
    h = jnp.maximum(h, 0.0)
    # fc2 partial product; keep the intermediate in the weight dtype so a bf16
    # model gets a bf16 MXU pass (no-op cast for f32).  Accumulate in f32.
    acc_ref[...] += jnp.dot(h.astype(w2_ref.dtype), w2_ref[...],
                            preferred_element_type=jnp.float32)

    @pl.when(k == pl.num_programs(1) - 1)
    def _():
        # Residual add + LayerNorm epilogue, f32 throughout.
        y = acc_ref[...] + x.astype(jnp.float32)
        # Padded lanes of y are exactly 0, so single-pass sums over the padded
        # width divided by the real d_model (inv_d = 1/d_model) are exact.
        s1 = jnp.sum(y, axis=-1, keepdims=True)
        s2 = jnp.sum(y * y, axis=-1, keepdims=True)
        mean = s1 * inv_d
        var = s2 * inv_d - mean * mean
        inv = jax.lax.rsqrt(var + eps)
        out = (y - mean) * inv * gamma_ref[...].astype(jnp.float32) \
            + beta_ref[...].astype(jnp.float32)
        o_ref[...] = out.astype(o_ref.dtype)


def poswise_ffn(x, w1, w2, gamma, beta, *, eps=1e-5, block_rows=256,
                block_ff=None):
    """x: [B, S, d_model]; w1: [d_model, d_ff]; w2: [d_ff, d_model];
    gamma, beta: [d_model].  Weights stored pre-transposed (row-major matmul)."""
    B, S, d_model = x.shape
    d_ff = w1.shape[1]
    N = B * S

    xb = jnp.dtype(x.dtype).itemsize
    wb = jnp.dtype(w1.dtype).itemsize

    # Lane-dense padding targets.
    dm_p = _round_up(d_model, 128)
    dff_p = _round_up(d_ff, 128)

    # Tile selection: rows per step (multiple of 16 for bf16 sublanes), d_ff
    # slab per step (multiple of 128).  Shrink until the footprint fits VMEM.
    tm = max(16, _round_up(min(block_rows, _round_up(N, 16)), 16))
    if block_ff is None:
        tk = dff_p
        while _vmem_footprint(tm, tk, dm_p, xb, wb) > _VMEM_BUDGET and tk > 128:
            tk = max(128, _round_up(tk // 2, 128))
        while _vmem_footprint(tm, tk, dm_p, xb, wb) > _VMEM_BUDGET and tm > 16:
            tm = max(16, _round_up(tm // 2, 16))
    else:
        tk = max(128, _round_up(min(block_ff, dff_p), 128))

    dff_pad = _round_up(dff_p, tk)
    n_pad = _round_up(N, tm)

    def pad2d(a, rows, cols):
        r, c = a.shape
        if (r, c) == (rows, cols):
            return a
        return jnp.pad(a, ((0, rows - r), (0, cols - c)))

    x_p = pad2d(x.reshape(N, d_model), n_pad, dm_p)
    w1_p = pad2d(w1, dm_p, dff_pad)
    w2_p = pad2d(w2, dff_pad, dm_p)
    g_p = pad2d(gamma.reshape(1, d_model), 1, dm_p)
    b_p = pad2d(beta.reshape(1, d_model), 1, dm_p)

    kernel = functools.partial(_ffn_kernel, inv_d=1.0 / d_model, eps=eps)

    n_row_tiles = n_pad // tm
    nk = dff_pad // tk
    # Weights are fetched once if resident (nk == 1), else once per row tile.
    w_fetches = 1 if nk == 1 else n_row_tiles
    cost = pl.CostEstimate(
        flops=4 * n_pad * dm_p * dff_pad,                     # 2 matmuls
        transcendentals=n_pad,                                # rsqrt per row
        bytes_accessed=int(2 * n_pad * dm_p * xb              # x in + out
                           + w_fetches * 2 * dm_p * dff_pad * wb
                           + 4 * dm_p * jnp.dtype(gamma.dtype).itemsize),
    )

    vmem_limit = min(
        64 * 1024 * 1024,
        max(int(_vmem_footprint(tm, tk, dm_p, xb, wb) * 1.3) + (2 << 20),
            16 * 1024 * 1024))

    out_p = pl.pallas_call(
        kernel,
        out_shape=jax.ShapeDtypeStruct((n_pad, dm_p), x.dtype),
        grid_spec=pltpu.PrefetchScalarGridSpec(
            num_scalar_prefetch=0,
            grid=(n_row_tiles, nk),
            in_specs=[
                pl.BlockSpec((tm, dm_p), lambda i, k: (i, 0)),    # x row tile
                pl.BlockSpec((dm_p, tk), lambda i, k: (0, k)),    # W1 slab
                pl.BlockSpec((tk, dm_p), lambda i, k: (k, 0)),    # W2 slab
                pl.BlockSpec((1, dm_p), lambda i, k: (0, 0)),     # gamma
                pl.BlockSpec((1, dm_p), lambda i, k: (0, 0)),     # beta
            ],
            out_specs=pl.BlockSpec((tm, dm_p), lambda i, k: (i, 0)),
            scratch_shapes=[pltpu.VMEM((tm, dm_p), jnp.float32)],
        ),
        compiler_params=pltpu.CompilerParams(
            dimension_semantics=("parallel", "arbitrary"),
            vmem_limit_bytes=vmem_limit,
        ),
        cost_estimate=cost,
    )(x_p, w1_p, w2_p, g_p, b_p)

    return out_p[:N, :d_model].reshape(B, S, d_model)


def _reference(x, w1, w2, gamma, beta, eps=1e-5):
    h = jnp.maximum(x @ w1, 0.0)
    y = h @ w2 + x
    mean = jnp.mean(y, axis=-1, keepdims=True)
    var = jnp.mean((y - mean) ** 2, axis=-1, keepdims=True)
    return (y - mean) / jnp.sqrt(var + eps) * gamma + beta


if __name__ == "__main__":
    def check(B, S, d_model, d_ff, **kw):
        key = jax.random.PRNGKey(0)
        kx, k1, k2, kg, kb = jax.random.split(key, 5)
        x = jax.random.normal(kx, (B, S, d_model), dtype=jnp.float32)
        # Deterministic parameter init (Linear weights stored pre-transposed).
        w1 = jax.random.normal(k1, (d_model, d_ff), dtype=jnp.float32) * 0.1
        w2 = jax.random.normal(k2, (d_ff, d_model), dtype=jnp.float32) * 0.1
        gamma = 1.0 + 0.1 * jax.random.normal(kg, (d_model,), dtype=jnp.float32)
        beta = 0.1 * jax.random.normal(kb, (d_model,), dtype=jnp.float32)

        out = jax.block_until_ready(poswise_ffn(x, w1, w2, gamma, beta, **kw))
        ref = _reference(x, w1, w2, gamma, beta)
        assert out.shape == (B, S, d_model)
        err = float(jnp.max(jnp.abs(out - ref)))
        assert jnp.allclose(out, ref, atol=1e-3, rtol=1e-3), \
            f"max abs err {err}"

    # Small shapes consistent with the module: batch=2, seq=8, d_model=32,
    # d_ff=64 (single d_ff step -> weights stay VMEM-resident).
    check(2, 8, 32, 64)
    # Exercise the d_ff-accumulation path: 2 row tiles x 4 d_ff slabs.
    check(2, 32, 128, 512, block_rows=32, block_ff=128)

    print("KERNEL_OK")
</pallas_src>

<mosaic_0001>
module attributes {stable_mosaic.version = 11 : i64} {
  func.func @_ffn_kernel(%arg0: i32, %arg1: i32, %arg2: memref<16x128xf32, #tpu.memory_space<vmem>>, %arg3: memref<128x128xf32, #tpu.memory_space<vmem>>, %arg4: memref<128x128xf32, #tpu.memory_space<vmem>>, %arg5: memref<1x128xf32, #tpu.memory_space<vmem>>, %arg6: memref<1x128xf32, #tpu.memory_space<vmem>>, %arg7: memref<16x128xf32, #tpu.memory_space<vmem>>, %arg8: memref<16x128xf32, #tpu.memory_space<vmem>>) attributes {dimension_semantics = [#tpu.dimension_semantics<parallel>, #tpu.dimension_semantics<arbitrary>], iteration_bounds = array<i64: 1, 1>, scalar_prefetch = 0 : i64, scratch_operands = 1 : i64, tpu.core_type = #tpu.core_type<tc>, window_params = [{transform_indices = @transform_0, window_bounds = array<i64: 16, 128>}, {transform_indices = @transform_1, window_bounds = array<i64: 128, 128>}, {transform_indices = @transform_2, window_bounds = array<i64: 128, 128>}, {pipeline_mode = #tpu.pipeline_mode<synchronous>, transform_indices = @transform_3, window_bounds = array<i64: 1, 128>}, {pipeline_mode = #tpu.pipeline_mode<synchronous>, transform_indices = @transform_4, window_bounds = array<i64: 1, 128>}, {transform_indices = @transform_5, window_bounds = array<i64: 16, 128>}]} {
    %c0_i32 = arith.constant 0 : i32
    %0 = arith.cmpi eq, %arg1, %c0_i32 : i32
    %1 = arith.extui %0 : i1 to i32
    %c0_i32_0 = arith.constant 0 : i32
    %2 = arith.cmpi ne, %1, %c0_i32_0 : i32
    scf.if %2 {
      %cst_14 = arith.constant 0.000000e+00 : f32
      %16 = vector.broadcast %cst_14 : f32 to vector<16x128xf32>
      %c0_15 = arith.constant 0 : index
      %c0_16 = arith.constant 0 : index
      %17 = vector.load %arg8[%c0_15, %c0_16] : memref<16x128xf32, #tpu.memory_space<vmem>>, vector<16x128xf32>
      tpu.vector_store %arg8[%c0_15, %c0_16], %16 {strides = array<i32>} : memref<16x128xf32, #tpu.memory_space<vmem>>, vector<16x128xf32>,
    } else {
    }
    %c0 = arith.constant 0 : index
    %c0_1 = arith.constant 0 : index
    %3 = vector.load %arg2[%c0, %c0_1] : memref<16x128xf32, #tpu.memory_space<vmem>>, vector<16x128xf32>
    %c0_2 = arith.constant 0 : index
    %c0_3 = arith.constant 0 : index
    %4 = vector.load %arg3[%c0_2, %c0_3] : memref<128x128xf32, #tpu.memory_space<vmem>>, vector<128x128xf32>
    %cst = arith.constant dense<0.000000e+00> : vector<16x128xf32>
    %5 = tpu.matmul %3, %4, %cst {dimension_numbers = #tpu.dot_dimension_numbers<[1], [0], [0], [1], [0, 0, 1, 1], [], []>} : vector<16x128xf32>, vector<128x128xf32>, vector<16x128xf32> -> vector<16x128xf32>
    %cst_4 = arith.constant 0.000000e+00 : f32
    %6 = vector.broadcast %cst_4 : f32 to vector<16x128xf32>
    %7 = arith.maximumf %5, %6 : vector<16x128xf32>
    %c0_5 = arith.constant 0 : index
    %c0_6 = arith.constant 0 : index
    %8 = vector.load %arg8[%c0_5, %c0_6] : memref<16x128xf32, #tpu.memory_space<vmem>>, vector<16x128xf32>
    %c0_7 = arith.constant 0 : index
    %c0_8 = arith.constant 0 : index
    %9 = vector.load %arg4[%c0_7, %c0_8] : memref<128x128xf32, #tpu.memory_space<vmem>>, vector<128x128xf32>
    %cst_9 = arith.constant dense<0.000000e+00> : vector<16x128xf32>
    %10 = tpu.matmul %7, %9, %cst_9 {dimension_numbers = #tpu.dot_dimension_numbers<[1], [0], [0], [1], [0, 0, 1, 1], [], []>} : vector<16x128xf32>, vector<128x128xf32>, vector<16x128xf32> -> vector<16x128xf32>
    %11 = arith.addf %8, %10 : vector<16x128xf32>
    %c0_10 = arith.constant 0 : index
    %c0_11 = arith.constant 0 : index
    %12 = vector.load %arg8[%c0_10, %c0_11] : memref<16x128xf32, #tpu.memory_space<vmem>>, vector<16x128xf32>
    tpu.vector_store %arg8[%c0_10, %c0_11], %11 {strides = array<i32>} : memref<16x128xf32, #tpu.memory_space<vmem>>, vector<16x128xf32>,
    %c0_i32_12 = arith.constant 0 : i32
    %13 = arith.cmpi eq, %arg1, %c0_i32_12 : i32
    %14 = arith.extui %13 : i1 to i32
    %c0_i32_13 = arith.constant 0 : i32
    %15 = arith.cmpi ne, %14, %c0_i32_13 : i32
    scf.if %15 {
      %c0_14 = arith.constant 0 : index
      %c0_15 = arith.constant 0 : index
      %16 = vector.load %arg8[%c0_14, %c0_15] : memref<16x128xf32, #tpu.memory_space<vmem>>, vector<16x128xf32>
      %17 = arith.addf %16, %3 : vector<16x128xf32>
      %cst_16 = arith.constant dense<0.000000e+00> : vector<16xf32>
      %18 = vector.multi_reduction <add>, %17, %cst_16 [1] : vector<16x128xf32> to vector<16xf32>
      %19 = vector.shape_cast %18 : vector<16xf32> to vector<16x1xf32>
      %20 = arith.mulf %17, %17 : vector<16x128xf32>
      %cst_17 = arith.constant dense<0.000000e+00> : vector<16xf32>
      %21 = vector.multi_reduction <add>, %20, %cst_17 [1] : vector<16x128xf32> to vector<16xf32>
      %22 = vector.shape_cast %21 : vector<16xf32> to vector<16x1xf32>
      %cst_18 = arith.constant 3.125000e-02 : f32
      %23 = vector.broadcast %cst_18 : f32 to vector<16x1xf32>
      %24 = arith.mulf %19, %23 : vector<16x1xf32>
      %cst_19 = arith.constant 3.125000e-02 : f32
      %25 = vector.broadcast %cst_19 : f32 to vector<16x1xf32>
      %26 = arith.mulf %22, %25 : vector<16x1xf32>
      %27 = arith.mulf %24, %24 : vector<16x1xf32>
      %28 = arith.subf %26, %27 : vector<16x1xf32>
      %cst_20 = arith.constant 9.99999974E-6 : f32
      %29 = vector.broadcast %cst_20 : f32 to vector<16x1xf32>
      %30 = arith.addf %28, %29 : vector<16x1xf32>
      %31 = math.rsqrt %30 : vector<16x1xf32>
      %32 = vector.broadcast %24 : vector<16x1xf32> to vector<16x128xf32>
      %33 = arith.subf %17, %32 : vector<16x128xf32>
      %34 = vector.broadcast %31 : vector<16x1xf32> to vector<16x128xf32>
      %35 = arith.mulf %33, %34 : vector<16x128xf32>
      %c0_21 = arith.constant 0 : index
      %c0_22 = arith.constant 0 : index
      %36 = vector.load %arg5[%c0_21, %c0_22] : memref<1x128xf32, #tpu.memory_space<vmem>>, vector<1x128xf32>
      %37 = vector.broadcast %36 : vector<1x128xf32> to vector<16x128xf32>
      %38 = arith.mulf %35, %37 : vector<16x128xf32>
      %c0_23 = arith.constant 0 : index
      %c0_24 = arith.constant 0 : index
      %39 = vector.load %arg6[%c0_23, %c0_24] : memref<1x128xf32, #tpu.memory_space<vmem>>, vector<1x128xf32>
      %40 = vector.broadcast %39 : vector<1x128xf32> to vector<16x128xf32>
      %41 = arith.addf %38, %40 : vector<16x128xf32>
      %c0_25 = arith.constant 0 : index
      %c0_26 = arith.constant 0 : index
      %42 = vector.load %arg7[%c0_25, %c0_26] : memref<16x128xf32, #tpu.memory_space<vmem>>, vector<16x128xf32>
      tpu.vector_store %arg7[%c0_25, %c0_26], %41 {strides = array<i32>} : memref<16x128xf32, #tpu.memory_space<vmem>>, vector<16x128xf32>,
    } else {
    }
    return
  }
  func.func @transform_0(%arg0: i32, %arg1: i32) -> (i32, i32) {
    %c0_i32 = arith.constant 0 : i32
    %c0_i32_0 = arith.constant 0 : i32
    return %arg0, %c0_i32 : i32, i32
  }
  func.func @transform_1(%arg0: i32, %arg1: i32) -> (i32, i32) {
    %c0_i32 = arith.constant 0 : i32
    %c0_i32_0 = arith.constant 0 : i32
    return %c0_i32, %arg1 : i32, i32
  }
  func.func @transform_2(%arg0: i32, %arg1: i32) -> (i32, i32) {
    %c0_i32 = arith.constant 0 : i32
    %c0_i32_0 = arith.constant 0 : i32
    return %arg1, %c0_i32 : i32, i32
  }
  func.func @transform_3(%arg0: i32, %arg1: i32) -> (i32, i32) {
    %c0_i32 = arith.constant 0 : i32
    %c0_i32_0 = arith.constant 0 : i32
    %c0_i32_1 = arith.constant 0 : i32
    return %c0_i32, %c0_i32_0 : i32, i32
  }
  func.func @transform_4(%arg0: i32, %arg1: i32) -> (i32, i32) {
    %c0_i32 = arith.constant 0 : i32
    %c0_i32_0 = arith.constant 0 : i32
    %c0_i32_1 = arith.constant 0 : i32
    return %c0_i32, %c0_i32_0 : i32, i32
  }
  func.func @transform_5(%arg0: i32, %arg1: i32) -> (i32, i32) {
    %c0_i32 = arith.constant 0 : i32
    %c0_i32_0 = arith.constant 0 : i32
    return %arg0, %c0_i32 : i32, i32
  }
}

</mosaic_0001>

<bundles_post_ra>
// kernel: tpu_custom_call.1
= control target key start
LH: loop header
LB: loop body
LE: loop exit
PB: predicated region body
PF: predicated region fallthrough
CT: control target
= control target key end

     0   :  { %10 = vsyncpa [#allocation4], 0  ;;  %s720_s0 = inlined_call_operand.hbm [shape: f32[16,128], index: 0, kind: input, shape index: {}]   ;;  %s721_s1 = inlined_call_operand.hbm [shape: f32[128,128], index: 1, kind: input, shape index: {}]   ;;  %s722_s2 = inlined_call_operand.hbm [shape: f32[128,128], index: 2, kind: input, shape index: {}]   ;;  %s723_s3 = inlined_call_operand.vmem [shape: f32[1,128], index: 3, kind: input, shape index: {}]   ;;  %s724_s4 = inlined_call_operand.vmem [shape: f32[1,128], index: 4, kind: input, shape index: {}]   ;;  %s725_s5 = inlined_call_operand.hbm [shape: f32[16,128], index: 5, kind: output, shape index: {}]  }
   0x1   :  { %11 = vsyncpa [#allocation7], 0 }
   0x2   :  { %12 = vsyncpa [#allocation5], 0  ;;  %s607_s18 = smov [#allocation6]   ;;  %s608_s20 = smov [#allocation3]  }
   0x3   :  { %s30_s19 = sshll.u32 %s607_s18, 4  ;;  %s18_s21 = sshll.u32 %s608_s20, 4  ;;  %s31_s19 = int_to_ptr.vmem [resolvable:$true] %s30_s19  ;;  %s643_s21 = int_to_ptr.vmem [resolvable:$true] %s18_s21 }
   0x4   :  { %s513_s24 = scalar_lea.hbm %s721_s1, 2048 }
   0x5   :  { %p514_p0 = scmp.ne.s32.totalorder %s721_s1, %s513_s24  ;;  %p517_p1 = scmp.lt.u32.totalorder %s513_s24, %s721_s1 }
   0x7   :  { %p519_p2 = pnand %p517_p1, %p514_p0 }
   0x9   :  { %522 = shalt.err (!%p519_p2)
}
   0xa   :  { %s523_s29 = scalar_lea.vmem %s31_s19, 2048  ;;  %p528_p4 = scmp.lt.s32.totalorder %s31_s19, %s31_s19 }
   0xb   :  { %p524_p3 = scmp.ne.s32.totalorder %s31_s19, %s523_s29  ;;  %p529_p5 = scmp.lt.s32.totalorder %s523_s29, %s523_s29 }
   0xd   :  { %p530_p6 = por %p529_p5, %p528_p4 }
   0xf   :  { %p531_p7 = pnand %p530_p6, %p524_p3 }
  0x11   :  { %534 = shalt.err (!%p531_p7)
}
  0x12   :  { %s609_s30 = smov 128   ;;  %s610_s6 = smov 8  }
  0x13   :  { %36 = dma.hbm_to_vmem [thread:$0]  %s721_s1, 2048, %s31_s19, [#allocation7], %s609_s30, %s609_s30, %s610_s6  }
  0x14   :  { %s535_s11 = scalar_lea.hbm %s720_s0, 256 }
  0x15   :  { %p536_p8 = scmp.ne.s32.totalorder %s720_s0, %s535_s11  ;;  %p539_p9 = scmp.lt.u32.totalorder %s535_s11, %s720_s0 }
  0x17   :  { %p541_p10 = pnand %p539_p9, %p536_p8 }
  0x19   :  { %544 = shalt.err (!%p541_p10)
}
  0x1a   :  { %s545_s16 = scalar_lea.vmem %s643_s21, 256  ;;  %p550_p12 = scmp.lt.s32.totalorder %s643_s21, %s643_s21 }
  0x1b   :  { %p546_p11 = scmp.ne.s32.totalorder %s643_s21, %s545_s16  ;;  %p551_p13 = scmp.lt.s32.totalorder %s545_s16, %s545_s16 }
  0x1d   :  { %p552_p0 = por %p551_p13, %p550_p12 }
  0x1f   :  { %p553_p1 = pnand %p552_p0, %p546_p11 }
  0x21   :  { %556 = shalt.err (!%p553_p1)
}
  0x22   :  { %24 = dma.hbm_to_vmem [thread:$0]  %s720_s0, 256, %s643_s21, [#allocation4], %s609_s30, %s609_s30, %s610_s6  }
  0x23   :  { %s611_s18 = smov [#allocation8]   ;;  %s557_s23 = scalar_lea.hbm %s722_s2, 2048 }
  0x24   :  { %s42_s19 = sshll.u32 %s611_s18, 4  ;;  %p558_p2 = scmp.ne.s32.totalorder %s722_s2, %s557_s23  ;;  %s43_s19 = int_to_ptr.vmem [resolvable:$true] %s42_s19 }
  0x25   :  { %p561_p3 = scmp.lt.u32.totalorder %s557_s23, %s722_s2 }
  0x27   :  { %p563_p4 = pnand %p561_p3, %p558_p2 }
  0x29   :  { %566 = shalt.err (!%p563_p4)
}
  0x2a   :  { %s567_s28 = scalar_lea.vmem %s43_s19, 2048  ;;  %p572_p6 = scmp.lt.s32.totalorder %s43_s19, %s43_s19 }
  0x2b   :  { %p568_p5 = scmp.ne.s32.totalorder %s43_s19, %s567_s28  ;;  %p573_p7 = scmp.lt.s32.totalorder %s567_s28, %s567_s28 }
  0x2d   :  { %p574_p8 = por %p573_p7, %p572_p6 }
  0x2f   :  { %p575_p9 = pnand %p574_p8, %p568_p5 }
  0x31   :  { %578 = shalt.err (!%p575_p9)
}
  0x32   :  { %48 = dma.hbm_to_vmem [thread:$0]  %s722_s2, 2048, %s43_s19, [#allocation7], %s609_s30, %s609_s30, %s610_s6  }
  0x33   :  { %601 = dma.done.wait [#allocation4], 256  }
  0x34   :  { %602 = vsyncadd [#allocation4], 4294967040 }
  0x35   :  { %603 = dma.done.wait [#allocation7], 4096  }
  0x36   :  { %604 = vsyncadd [#allocation7], 4294963200  ;;  %v70_v0 = vld [vmem:[#allocation6] sm:$0xff]  ;;  %v71_v1 = vld [vmem:[#allocation6 + $0x8] sm:$0xff]  ;;  %s612_s9 = smov [#allocation9]  }
  0x37   :  { %v72_v2 = vld [vmem:[#allocation6 + $0x10] sm:$0xff]  ;;  %v439_v3 = vpack.c.bf16 %v71_v1, %v70_v0  ;;  %v73_v4 = vld [vmem:[#allocation6 + $0x18] sm:$0xff]  ;;  %v74_v6 = vld [vmem:[#allocation6 + $0x20] sm:$0xff]  ;;  %s318_s10 = sshll.u32 %s612_s9, 4  ;;  %s319_s10 = int_to_ptr.vmem [resolvable:$true] %s318_s10 }
  0x38   :  { %v443_v5 = vpack.c.bf16 %v73_v4, %v72_v2  ;;  %v75_v7 = vld [vmem:[#allocation6 + $0x28] sm:$0xff]  ;;  %v76_v9 = vld [vmem:[#allocation6 + $0x30] sm:$0xff]  ;;  %v77_v10 = vld [vmem:[#allocation6 + $0x38] sm:$0xff]  ;;  %s579_s11 = scalar_lea.vmem %s319_s10, 256  ;;  %p584_p11 = scmp.lt.s32.totalorder %s319_s10, %s319_s10 }
  0x39   :  { %440 = vmatprep.subr.bf16.mxu0 %v439_v3  ;;  %v447_v8 = vpack.c.bf16 %v75_v7, %v74_v6  ;;  %v695_v11 = vld [vmem:[#allocation3] sm:$0xff]  ;;  %v165_v12 = vld [vmem:[#allocation8] sm:$0xff]  ;;  %v166_v13 = vld [vmem:[#allocation8 + $0x8] sm:$0xff]  ;;  %v451_v20 = vpack.c.bf16 %v77_v10, %v76_v9  ;;  %p580_p10 = scmp.ne.s32.totalorder %s319_s10, %s579_s11  ;;  %p585_p12 = scmp.lt.s32.totalorder %s579_s11, %s579_s11 }
  0x3a   :  { %442 = vmatpush3.bf16.msra.mxu0 %v439_v3  ;;  %401 = vmatprep.mubr.f32.mxu0 %v695_v11  ;;  %v167_v14 = vld [vmem:[#allocation8 + $0x10] sm:$0xff]  ;;  %v471_v15 = vpack.c.bf16 %v166_v13, %v165_v12  ;;  %v168_v16 = vld [vmem:[#allocation8 + $0x18] sm:$0xff]  ;;  %v169_v18 = vld [vmem:[#allocation8 + $0x20] sm:$0xff] }
  0x3b   :  { %444 = vmatprep.subr.bf16.mxu0 %v443_v5  ;;  %v475_v17 = vpack.c.bf16 %v168_v16, %v167_v14  ;;  %v170_v19 = vld [vmem:[#allocation8 + $0x28] sm:$0xff]  ;;  %v78_v21 = vld [vmem:[#allocation6 + $0x40] sm:$0xff]  ;;  %v171_v24 = vld [vmem:[#allocation8 + $0x30] sm:$0xff]  ;;  %p586_p13 = por %p585_p12, %p584_p11 }
  0x3c   :  { %472 = vmatprep.subr.bf16.mxu1 %v471_v15  ;;  %v79_v22 = vld [vmem:[#allocation6 + $0x48] sm:$0xff]  ;;  %v479_v23 = vpack.c.bf16 %v170_v19, %v169_v18  ;;  %v172_v25 = vld [vmem:[#allocation8 + $0x38] sm:$0xff]  ;;  %v80_v27 = vld [vmem:[#allocation6 + $0x50] sm:$0xff] }
  0x3d   :  { %474 = vmatpush3.bf16.msra.mxu1 %v471_v15  ;;  %v455_v26 = vpack.c.bf16 %v79_v22, %v78_v21  ;;  %v81_v28 = vld [vmem:[#allocation6 + $0x58] sm:$0xff]  ;;  %v483_v29 = vpack.c.bf16 %v172_v25, %v171_v24  ;;  %v173_v30 = vld [vmem:[#allocation8 + $0x40] sm:$0xff]  ;;  %v174_v31 = vld [vmem:[#allocation8 + $0x48] sm:$0xff]  ;;  %p587_p0 = pnand %p586_p13, %p580_p10 }
  0x3e   :  { %446 = vmatpush3.bf16.msra.mxu0 %v443_v5  ;;  %476 = vmatprep.subr.bf16.mxu1 %v475_v17  ;;  %v459_v32 = vpack.c.bf16 %v81_v28, %v80_v27  ;;  %v82_v33 = vld [vmem:[#allocation6 + $0x60] sm:$0xff]  ;;  %v83_v34 = vld [vmem:[#allocation6 + $0x68] sm:$0xff]  ;;  %v487_v35 = vpack.c.bf16 %v174_v31, %v173_v30  ;;  %v175_v36 = vld [vmem:[#allocation8 + $0x50] sm:$0xff] }
  0x3f   :  { %448 = vmatprep.subr.bf16.mxu0 %v447_v8  ;;  %v176_v37 = vld [vmem:[#allocation8 + $0x58] sm:$0xff]  ;;  %v463_v38 = vpack.c.bf16 %v83_v34, %v82_v33  ;;  %v84_v39 = vld [vmem:[#allocation6 + $0x70] sm:$0xff]  ;;  %v177_v42 = vld [vmem:[#allocation8 + $0x60] sm:$0xff] }
  0x40   :  { %v85_v40 = vld [vmem:[#allocation6 + $0x78] sm:$0xff]  ;;  %v491_v41 = vpack.c.bf16 %v176_v37, %v175_v36  ;;  %v178_v43 = vld [vmem:[#allocation8 + $0x68] sm:$0xff]  ;;  %v179_v47 = vld [vmem:[#allocation8 + $0x70] sm:$0xff] }
  0x41   :  { %478 = vmatpush3.bf16.msra.mxu1 %v475_v17  ;;  %v467_v44 = vpack.c.bf16 %v85_v40, %v84_v39  ;;  %v495_v45 = vpack.c.bf16 %v178_v43, %v177_v42  ;;  %v69_v46 = vld [vmem:[#allocation3 + $0x8] sm:$0xff]  ;;  %v331_v12 = vld [vmem:[%s723_s3] ss:$0 sm:$0xff] }
  0x42   :  { %450 = vmatpush3.bf16.msra.mxu0 %v447_v8  ;;  %480 = vmatprep.subr.bf16.mxu1 %v479_v23  ;;  %v180_v48 = vld [vmem:[#allocation8 + $0x78] sm:$0xff]  ;;  %v332_v14 = vld [vmem:[%s724_s4] ss:$0 sm:$0xff] }
  0x43   :  { %452 = vmatprep.subr.bf16.mxu0 %v451_v20  ;;  %v499_v49 = vpack.c.bf16 %v180_v48, %v179_v47 }
  0x45   :  { %482 = vmatpush3.bf16.msra.mxu1 %v479_v23 }
  0x46   :  { %454 = vmatpush3.bf16.msra.mxu0 %v451_v20  ;;  %484 = vmatprep.subr.bf16.mxu1 %v483_v29 }
  0x47   :  { %456 = vmatprep.subr.bf16.mxu0 %v455_v26 }
  0x49   :  { %486 = vmatpush3.bf16.msra.mxu1 %v483_v29 }
  0x4a   :  { %458 = vmatpush3.bf16.msra.mxu0 %v455_v26  ;;  %488 = vmatprep.subr.bf16.mxu1 %v487_v35 }
  0x4b   :  { %460 = vmatprep.subr.bf16.mxu0 %v459_v32 }
  0x4d   :  { %490 = vmatpush3.bf16.msra.mxu1 %v487_v35 }
  0x4e   :  { %462 = vmatpush3.bf16.msra.mxu0 %v459_v32  ;;  %492 = vmatprep.subr.bf16.mxu1 %v491_v41 }
  0x4f   :  { %464 = vmatprep.subr.bf16.mxu0 %v463_v38 }
  0x51   :  { %494 = vmatpush3.bf16.msra.mxu1 %v491_v41 }
  0x52   :  { %466 = vmatpush3.bf16.msra.mxu0 %v463_v38  ;;  %496 = vmatprep.subr.bf16.mxu1 %v495_v45 }
  0x53   :  { %468 = vmatprep.subr.bf16.mxu0 %v467_v44 }
  0x55   :  { %498 = vmatpush3.bf16.msra.mxu1 %v495_v45 }
  0x56   :  { %470 = vmatpush3.bf16.msra.mxu0 %v467_v44  ;;  %500 = vmatprep.subr.bf16.mxu1 %v499_v49 }
  0x59   :  { %402 = vmatmul.mubr.f32.vlgmr.msra.gmra.mrb[0].mxu0 %v69_v46  ;;  %502 = vmatpush3.bf16.msra.mxu1 %v499_v49 }
 0x12c   :  { %v403_v50 = vpop.f32.mrb[0].mxu0 }
 0x12d   :  { %v152_v51 = vpop.f32.mrb[1].mxu0  ;;  %v162_v53 = vmax.f32 %v403_v50, 0.0 }
 0x12e   :  { %v161_v52 = vmax.f32 %v152_v51, 0.0 }
 0x130   :  { %436 = vmatprep.mubr.f32.mxu1 %v161_v52 }
 0x131   :  { %437 = vmatmul.mubr.f32.vlgmr.msra.gmra.mrb[0].mxu1 %v162_v53 }
 0x204   :  { %v438_v54 = vpop.f32.mrb[0].mxu1 }
 0x205   :  { %v247_v55 = vpop.f32.mrb[1].mxu1  ;;  %v266_v57 = vadd.f32 %v438_v54, %v69_v46 }
 0x206   :  { %v265_v56 = vadd.f32 %v247_v55, %v695_v11 }
 0x207   :  { %v272_v59 = vmul.f32 %v266_v57, %v266_v57 }
 0x208   :  { %267 = vadd.xlane.f32.xlu0 %v265_v56  ;;  %v271_v58 = vmul.f32 %v265_v56, %v265_v56 }
 0x20a   :  { %273 = vadd.xlane.f32.xlu1 %v271_v58 }
 0x20c   :  { %269 = vadd.xlane.f32.xlu0 %v266_v57 }
 0x20e   :  { %275 = vadd.xlane.f32.xlu1 %v272_v59 }
 0x295   :  { %v268_v60 = vpop.xlane.xlu0 %267 }
 0x296   :  { %v277_v61 = vmul.f32 0.03125, %v268_v60 }
 0x297   :  { %v274_v62 = vpop.xlane.xlu1 %273 }
 0x298   :  { %v281_v63 = vmul.f32 %v277_v61, %v277_v61  ;;  %v279_v0 = vmul.f32 0.03125, %v274_v62  ;;  %v289_v10 = vsub.f32 %v265_v56, %v277_v61 }
 0x299   :  { %v270_v1 = vpop.xlane.xlu0 %269 }
 0x29a   :  { %v283_v2 = vsub.f32 %v279_v0, %v281_v63  ;;  %v278_v3 = vmul.f32 0.03125, %v270_v1 }
 0x29b   :  { %v276_v4 = vpop.xlane.xlu1 %275 }
 0x29c   :  { %v285_v5 = vadd.f32 1e-05, %v283_v2  ;;  %v282_v6 = vmul.f32 %v278_v3, %v278_v3  ;;  %v280_v7 = vmul.f32 0.03125, %v276_v4  ;;  %v290_v15 = vsub.f32 %v266_v57, %v278_v3 }
 0x29e   :  { %509 = vrsqrt.f32 %v285_v5  ;;  %v284_v8 = vsub.f32 %v280_v7, %v282_v6 }
 0x2a0   :  { %v286_v9 = vadd.f32 1e-05, %v284_v8 }
 0x2a2   :  { %511 = vrsqrt.f32 %v286_v9 }
 0x2a8   :  { %v510_v11 = vpop.eup %509 }
 0x2a9   :  { %v291_v13 = vmul.f32 %v510_v11, %v289_v10 }
 0x2ab   :  { %v300_v16 = vmul.f32 %v331_v12, %v291_v13 }
 0x2ac   :  { %v512_v17 = vpop.eup %511 }
 0x2ad   :  { %v292_v18 = vmul.f32 %v512_v17, %v290_v15  ;;  %v309_v19 = vadd.f32 %v332_v14, %v300_v16 }
 0x2af   :  { %v301_v20 = vmul.f32 %v331_v12, %v292_v18  ;;  %311 = vst [vmem:[#allocation9] sm:$0xff] %v309_v19 }
 0x2b1   :  { %v310_v21 = vadd.f32 %v332_v14, %v301_v20 }
 0x2b3   :  { %312 = vst [vmem:[#allocation9 + $0x8] sm:$0xff] %v310_v21 }
 0x2b4   :  { %590 = shalt.err (!%p587_p0)
}
 0x2b5   :  { %s591_s12 = scalar_lea.hbm %s725_s5, 256 }
 0x2b6   :  { %p592_p1 = scmp.ne.s32.totalorder %s725_s5, %s591_s12  ;;  %p595_p2 = scmp.lt.u32.totalorder %s591_s12, %s725_s5 }
 0x2b8   :  { %p597_p3 = pnand %p595_p2, %p592_p1 }
 0x2ba   :  { %600 = shalt.err (!%p597_p3)
}
 0x2bb   :  { %324 = dma.vmem_to_hbm [thread:$0]  %s319_s10, 256, %s725_s5, [#allocation5], %s609_s30, %s609_s30, %s610_s6  }
 0x2bc   :  { %605 = dma.done.wait [#allocation5], 256  }
 0x2bd   :  { %606 = vsyncadd [#allocation5], 4294967040 }
 0x2be   :  { %328 = vsyncpa [#allocation4], 1 }
 0x2bf   :  { %329 = vsyncpa [#allocation7], 1 }
 0x2c0   :  { %330 = vsyncpa [#allocation5], 1 }

</bundles_post_ra>
